<compile_context>
chip_gen: v6e
topology: v6e:2x2x1
jax: 0.10.0
libtpu: 0.0.40
codegen_flags: <defaults>
</compile_context>

<pallas_src>
import functools

import jax
import jax.numpy as jnp
from jax.experimental import pallas as pl
from jax.experimental.pallas import tpu as pltpu

_SUBLANE = 8    # f32 sublane tile
_LANE = 128     # lane tile


def _round_up(n, m):
    return (n + m - 1) // m * m


def _jacobi_thetas(i, a, b):
    theta_k = (2 * i + a + b) * (2 * i + a + b - 1) / (2 * i * (i + a + b))
    theta_k1 = ((2 * i + a + b - 1) * (a * a - b * b)
                / (2 * i * (i + a + b) * (2 * i + a + b - 2)))
    theta_k2 = ((i + a - 1) * (i + b - 1) * (2 * i + a + b)
                / (i * (i + a + b) * (2 * i + a + b - 2)))
    return theta_k, theta_k1, theta_k2


def _jacobikan_kernel(x_ref, coeffs_t_ref, o_ref, *, degree, a, b, mxu_dtype):
    # x_ref:        (block_b, I)            -- one batch-row tile
    # coeffs_t_ref: (O, (degree+1)*I)       -- constant slab, resident in VMEM
    # o_ref:        (O, block_b)            -- transposed, lane-dense store
    #
    # Transpose the (narrow) x tile once so the lane axis is the wide batch
    # tile: the recurrence then runs on lane-dense vregs and the MXU result
    # lands directly in the lane-dense store orientation.  Transposing here
    # (I rows) is (degree+1)x cheaper than transposing the finished basis.
    x = jnp.tanh(x_ref[...].T.astype(jnp.float32))          # (I, block_b), f32

    polys = [jnp.ones_like(x)]                              # J_0 = 1
    if degree > 0:
        polys.append((a - b + (a + b + 2.0) * x) * 0.5)     # J_1
    for i in range(2, degree + 1):
        tk, tk1, tk2 = _jacobi_thetas(float(i), a, b)       # trace-time constants
        polys.append((tk * x + tk1) * polys[-1] - tk2 * polys[-2])

    # One fused contraction with K = (degree+1)*I instead of degree+1
    # MXU-sliver dots plus VPU accumulate adds.  Each poly is cast to the MXU
    # dtype before the concat (half the concat bandwidth for bf16); the
    # accumulation stays f32.
    j_t = jnp.concatenate([p.astype(mxu_dtype) for p in polys], axis=0)
    acc = jnp.dot(coeffs_t_ref[...], j_t,
                  preferred_element_type=jnp.float32)       # (O, block_b)
    o_ref[...] = acc.astype(o_ref.dtype)


def prepare_coeffs(jacobi_coeffs, degree, mxu_dtype=jnp.bfloat16):
    """PyTorch-layout (I, O, degree+1) parameter -> (O, (degree+1)*I) kernel slab.

    Call once (cache / store the parameter in this layout) so the transpose and
    cast are not re-paid on every forward call."""
    input_dim, output_dim, d1 = jacobi_coeffs.shape
    if d1 != degree + 1:
        raise ValueError(f"jacobi_coeffs last dim {d1} != degree+1 = {degree + 1}")
    return (jnp.transpose(jacobi_coeffs, (1, 2, 0))          # (O, D+1, I)
            .reshape(output_dim, (degree + 1) * input_dim)
            .astype(mxu_dtype))


def _max_rows_for_vmem(input_dim, output_dim, degree, x_itemsize, vmem_limit_bytes):
    """Largest 128-aligned batch-row tile fitting a conservative VMEM budget."""
    budget = vmem_limit_bytes // 2                           # headroom for compiler temps
    per_row = (2 * input_dim * x_itemsize                    # double-buffered x tiles
               + 2 * output_dim * 4                          # double-buffered out tiles
               + 3 * input_dim * 4                           # live f32 x / J_{k-1} / J_k
               + (degree + 1) * input_dim * 6)               # J slab f32 + mxu-dtype copy
    coeff_bytes = (degree + 1) * input_dim * output_dim * 4
    rows = (budget - coeff_bytes) // per_row
    rows = max(_LANE, min(int(rows), 2048))                  # diminishing returns past ~2K rows
    return (rows // _LANE) * _LANE


def jacobikan_forward(x, jacobi_coeffs, *, degree, a=1.0, b=1.0,
                      block_b=None, mxu_dtype=jnp.bfloat16,
                      transposed_output=False,
                      vmem_limit_bytes=48 * 1024 * 1024):
    """JacobiKANLayer forward.

    x:             any shape whose total size is divisible by input_dim.
    jacobi_coeffs: either the PyTorch-layout (I, O, degree+1) parameter, or the
                   pre-prepared (O, (degree+1)*I) slab from prepare_coeffs().
    Returns float32 (B, O), or (O, B) if transposed_output=True (lets a fused
    consumer skip the final transpose).  Ragged batches are padded internally.
    """
    if degree < 0:
        raise ValueError("degree must be >= 0")

    if jacobi_coeffs.ndim == 3:
        input_dim, output_dim, d1 = jacobi_coeffs.shape
        if d1 != degree + 1:
            raise ValueError(f"jacobi_coeffs last dim {d1} != degree+1 = {degree + 1}")
        coeffs_t = prepare_coeffs(jacobi_coeffs, degree, mxu_dtype)
    elif jacobi_coeffs.ndim == 2:
        output_dim, k = jacobi_coeffs.shape
        if k % (degree + 1) != 0:
            raise ValueError("prepared coeffs row count must be (degree+1)*input_dim")
        input_dim = k // (degree + 1)
        coeffs_t = jacobi_coeffs.astype(mxu_dtype)
    else:
        raise ValueError("jacobi_coeffs must be rank 2 (prepared) or rank 3 (raw)")

    x2d = jnp.reshape(x, (-1, input_dim))
    B = x2d.shape[0]
    K = (degree + 1) * input_dim

    max_rows = _max_rows_for_vmem(input_dim, output_dim, degree,
                                  x2d.dtype.itemsize, vmem_limit_bytes)
    if block_b is None:
        if B <= 2 * _LANE:
            block_b = _round_up(max(B, 1), _LANE)            # one lane-dense tile
        else:
            # >=2 grid steps (keeps both v7x TensorCores fed), 128-aligned so
            # the transposed output block stays lane-dense, VMEM-bounded.
            block_b = max(_LANE, min(max_rows, _round_up(pl.cdiv(B, 2), _LANE)))
    elif block_b <= 0 or block_b % _LANE != 0:
        raise ValueError("block_b must be a positive multiple of 128 "
                         "(lane-dense transposed output store)")

    B_pad = _round_up(max(B, 1), block_b)
    if B_pad != B:
        x2d = jnp.pad(x2d, ((0, B_pad - B), (0, 0)))

    kernel = functools.partial(_jacobikan_kernel, degree=degree,
                               a=float(a), b=float(b), mxu_dtype=mxu_dtype)

    # Advisory cost hint for the XLA scheduler around the custom call.
    cost = pl.CostEstimate(
        flops=2 * B_pad * output_dim * K + 4 * max(degree, 1) * B_pad * input_dim,
        transcendentals=B_pad * input_dim,
        bytes_accessed=(B_pad * input_dim * x2d.dtype.itemsize
                        + B_pad * output_dim * 4
                        + output_dim * K * jnp.dtype(mxu_dtype).itemsize))

    out_t = pl.pallas_call(
        kernel,
        out_shape=jax.ShapeDtypeStruct((output_dim, B_pad), jnp.float32),
        grid_spec=pltpu.PrefetchScalarGridSpec(
            num_scalar_prefetch=0,
            grid=(B_pad // block_b,),
            in_specs=[
                pl.BlockSpec((block_b, input_dim), lambda i: (i, 0)),
                # Constant parameter slab: whole array resident in VMEM once —
                # no per-step DMA, no double buffering.
                pl.BlockSpec(memory_space=pltpu.MemorySpace.VMEM),
            ],
            out_specs=pl.BlockSpec((output_dim, block_b), lambda i: (0, i)),
        ),
        compiler_params=pltpu.CompilerParams(
            dimension_semantics=("parallel",),
            vmem_limit_bytes=vmem_limit_bytes),
        cost_estimate=cost,
    )(x2d, coeffs_t)

    out_t = out_t[:, :B]
    return out_t if transposed_output else out_t.T


def _reference_forward(x, jacobi_coeffs, *, degree, a=1.0, b=1.0):
    """Pure-JAX f32 reference mirroring the PyTorch forward."""
    input_dim = jacobi_coeffs.shape[0]
    x = jnp.tanh(jnp.reshape(x, (-1, input_dim)))
    polys = [jnp.ones_like(x)]
    if degree > 0:
        polys.append((a - b + (a + b + 2.0) * x) / 2.0)
    for i in range(2, degree + 1):
        tk, tk1, tk2 = _jacobi_thetas(float(i), a, b)
        polys.append((tk * x + tk1) * polys[-1] - tk2 * polys[-2])
    jacobi = jnp.stack(polys, axis=-1)                       # (B, I, D+1)
    return jnp.einsum('bid,iod->bo', jacobi, jacobi_coeffs)


if __name__ == "__main__":
    input_dim, output_dim, degree = 32, 16, 4
    a_coef, b_coef = 1.0, 1.0

    key = jax.random.PRNGKey(0)
    kx, kc, kx2 = jax.random.split(key, 3)

    # Deterministic parameter init, same shape/std as the PyTorch module.
    std = 1.0 / (input_dim * (degree + 1))
    jacobi_coeffs = std * jax.random.normal(
        kc, (input_dim, output_dim, degree + 1), dtype=jnp.float32)

    # --- small batch, single tile ------------------------------------------
    x = jax.random.normal(kx, (2, 4, input_dim), dtype=jnp.float32)   # 8 rows
    y_ref = _reference_forward(x, jacobi_coeffs, degree=degree, a=a_coef, b=b_coef)

    # exact-math path (f32 MXU operands): tight tolerance
    y_f32 = jax.block_until_ready(jacobikan_forward(
        x, jacobi_coeffs, degree=degree, a=a_coef, b=b_coef,
        mxu_dtype=jnp.float32))
    assert y_f32.shape == (8, output_dim)
    assert jnp.allclose(y_f32, y_ref, atol=2e-5, rtol=2e-5)

    # default path (bf16 MXU operands, f32 recurrence + f32 accumulation)
    y_bf16 = jax.block_until_ready(jacobikan_forward(
        x, jacobi_coeffs, degree=degree, a=a_coef, b=b_coef))
    assert y_bf16.shape == (8, output_dim)
    assert jnp.allclose(y_bf16, y_ref, atol=5e-3, rtol=5e-2)

    # --- ragged batch, multi-tile grid, pre-prepared coefficient slab -------
    coeffs_prepared = prepare_coeffs(jacobi_coeffs, degree, mxu_dtype=jnp.float32)
    x_big = jax.random.normal(kx2, (5, 50, input_dim), dtype=jnp.float32)  # 250 rows
    y_big = jax.block_until_ready(jacobikan_forward(
        x_big, coeffs_prepared, degree=degree, a=a_coef, b=b_coef,
        block_b=128, mxu_dtype=jnp.float32))
    y_big_ref = _reference_forward(x_big, jacobi_coeffs, degree=degree,
                                   a=a_coef, b=b_coef)
    assert y_big.shape == (250, output_dim)
    assert jnp.allclose(y_big, y_big_ref, atol=2e-5, rtol=2e-5)

    # --- degree 0 edge case --------------------------------------------------
    y_d0 = jax.block_until_ready(jacobikan_forward(
        x, jacobi_coeffs[:, :, :1], degree=0, a=a_coef, b=b_coef,
        mxu_dtype=jnp.float32))
    y_d0_ref = _reference_forward(x, jacobi_coeffs[:, :, :1], degree=0,
                                  a=a_coef, b=b_coef)
    assert jnp.allclose(y_d0, y_d0_ref, atol=2e-5, rtol=2e-5)

    print("KERNEL_OK")
</pallas_src>

<mosaic_0001>
module attributes {stable_mosaic.version = 11 : i64} {
  func.func @_jacobikan_kernel(%arg0: i32, %arg1: memref<128x32xf32, #tpu.memory_space<vmem>>, %arg2: memref<16x160xf32, #tpu.memory_space<vmem>>, %arg3: memref<16x128xf32, #tpu.memory_space<vmem>>) attributes {dimension_semantics = [#tpu.dimension_semantics<parallel>], iteration_bounds = array<i64: 1>, scalar_prefetch = 0 : i64, scratch_operands = 0 : i64, tpu.core_type = #tpu.core_type<tc>, window_params = [{transform_indices = @transform_0, window_bounds = array<i64: 128, 32>}, {pipeline_mode = #tpu.pipeline_mode<synchronous>, transform_indices = @transform_1, window_bounds = array<i64: 16, 160>}, {transform_indices = @transform_2, window_bounds = array<i64: 16, 128>}]} {
    %c0 = arith.constant 0 : index
    %c0_0 = arith.constant 0 : index
    %0 = vector.load %arg1[%c0, %c0_0] : memref<128x32xf32, #tpu.memory_space<vmem>>, vector<128x32xf32>
    %1 = tpu.transpose %0, [1, 0] : vector<128x32xf32> -> vector<32x128xf32>
    %2 = math.tanh %1 : vector<32x128xf32>
    %cst = arith.constant 1.000000e+00 : f32
    %3 = vector.broadcast %cst : f32 to vector<32x128xf32>
    %cst_1 = arith.constant 4.000000e+00 : f32
    %4 = vector.broadcast %cst_1 : f32 to vector<32x128xf32>
    %5 = arith.mulf %4, %2 : vector<32x128xf32>
    %cst_2 = arith.constant 0.000000e+00 : f32
    %6 = vector.broadcast %cst_2 : f32 to vector<32x128xf32>
    %7 = arith.addf %6, %5 : vector<32x128xf32>
    %cst_3 = arith.constant 5.000000e-01 : f32
    %8 = vector.broadcast %cst_3 : f32 to vector<32x128xf32>
    %9 = arith.mulf %7, %8 : vector<32x128xf32>
    %cst_4 = arith.constant 1.875000e+00 : f32
    %10 = vector.broadcast %cst_4 : f32 to vector<32x128xf32>
    %11 = arith.mulf %10, %2 : vector<32x128xf32>
    %cst_5 = arith.constant 0.000000e+00 : f32
    %12 = vector.broadcast %cst_5 : f32 to vector<32x128xf32>
    %13 = arith.addf %11, %12 : vector<32x128xf32>
    %14 = arith.mulf %13, %9 : vector<32x128xf32>
    %cst_6 = arith.constant 7.500000e-01 : f32
    %15 = vector.broadcast %cst_6 : f32 to vector<32x128xf32>
    %16 = arith.mulf %15, %3 : vector<32x128xf32>
    %17 = arith.subf %14, %16 : vector<32x128xf32>
    %cst_7 = arith.constant 1.86666667 : f32
    %18 = vector.broadcast %cst_7 : f32 to vector<32x128xf32>
    %19 = arith.mulf %18, %2 : vector<32x128xf32>
    %cst_8 = arith.constant 0.000000e+00 : f32
    %20 = vector.broadcast %cst_8 : f32 to vector<32x128xf32>
    %21 = arith.addf %19, %20 : vector<32x128xf32>
    %22 = arith.mulf %21, %17 : vector<32x128xf32>
    %cst_9 = arith.constant 8.000000e-01 : f32
    %23 = vector.broadcast %cst_9 : f32 to vector<32x128xf32>
    %24 = arith.mulf %23, %9 : vector<32x128xf32>
    %25 = arith.subf %22, %24 : vector<32x128xf32>
    %cst_10 = arith.constant 1.875000e+00 : f32
    %26 = vector.broadcast %cst_10 : f32 to vector<32x128xf32>
    %27 = arith.mulf %26, %2 : vector<32x128xf32>
    %cst_11 = arith.constant 0.000000e+00 : f32
    %28 = vector.broadcast %cst_11 : f32 to vector<32x128xf32>
    %29 = arith.addf %27, %28 : vector<32x128xf32>
    %30 = arith.mulf %29, %25 : vector<32x128xf32>
    %cst_12 = arith.constant 0.833333313 : f32
    %31 = vector.broadcast %cst_12 : f32 to vector<32x128xf32>
    %32 = arith.mulf %31, %17 : vector<32x128xf32>
    %33 = arith.subf %30, %32 : vector<32x128xf32>
    %34 = tpu.concatenate %3, %9, %17, %25, %33 in 0 : vector<32x128xf32>, vector<32x128xf32>, vector<32x128xf32>, vector<32x128xf32>, vector<32x128xf32> -> vector<160x128xf32>
    %c0_13 = arith.constant 0 : index
    %c0_14 = arith.constant 0 : index
    %35 = vector.load %arg2[%c0_13, %c0_14] : memref<16x160xf32, #tpu.memory_space<vmem>>, vector<16x160xf32>
    %cst_15 = arith.constant dense<0.000000e+00> : vector<16x128xf32>
    %36 = tpu.matmul %35, %34, %cst_15 {dimension_numbers = #tpu.dot_dimension_numbers<[1], [0], [0], [1], [0, 0, 1, 1], [], []>} : vector<16x160xf32>, vector<160x128xf32>, vector<16x128xf32> -> vector<16x128xf32>
    %c0_16 = arith.constant 0 : index
    %c0_17 = arith.constant 0 : index
    %37 = vector.load %arg3[%c0_16, %c0_17] : memref<16x128xf32, #tpu.memory_space<vmem>>, vector<16x128xf32>
    tpu.vector_store %arg3[%c0_16, %c0_17], %36 {strides = array<i32>} : memref<16x128xf32, #tpu.memory_space<vmem>>, vector<16x128xf32>,
    return
  }
  func.func @transform_0(%arg0: i32) -> (i32, i32) {
    %c0_i32 = arith.constant 0 : i32
    %c0_i32_0 = arith.constant 0 : i32
    return %arg0, %c0_i32 : i32, i32
  }
  func.func @transform_1(%arg0: i32) -> (i32, i32) {
    %c0_i32 = arith.constant 0 : i32
    %c0_i32_0 = arith.constant 0 : i32
    %c0_i32_1 = arith.constant 0 : i32
    return %c0_i32, %c0_i32_0 : i32, i32
  }
  func.func @transform_2(%arg0: i32) -> (i32, i32) {
    %c0_i32 = arith.constant 0 : i32
    %c0_i32_0 = arith.constant 0 : i32
    return %c0_i32, %arg0 : i32, i32
  }
}

</mosaic_0001>

<bundles_post_ra>
// kernel: tpu_custom_call.1
= control target key start
LH: loop header
LB: loop body
LE: loop exit
PB: predicated region body
PF: predicated region fallthrough
CT: control target
= control target key end

     0   :  { %s510_s0 = inlined_call_operand.vmem [shape: f32[128,32], index: 0, kind: input, shape index: {}]   ;;  %s511_s1 = inlined_call_operand.vmem [shape: f32[16,160], index: 1, kind: input, shape index: {}]   ;;  %s512_s2 = inlined_call_operand.hbm [shape: f32[16,128], index: 2, kind: output, shape index: {}]  }
   0x1   :  { %v12_v0 = vld [vmem:[%s510_s0] sm:$0xff]  ;;  %v13_v1 = vld [vmem:[%s510_s0 + $0x8] sm:$0xff] }
   0x2   :  { %28 = vxpose.xlu0.b32.start [1/16] (narrow) %v12_v0, 32 }
   0x6   :  { %29 = vxpose.xlu0.b32.cont [2/16] (narrow) %v13_v1, 32 }
   0x7   :  { %7 = vsyncpa [#allocation3], 0  ;;  %v14_v2 = vld [vmem:[%s510_s0 + $0x10] sm:$0xff]  ;;  %v15_v3 = vld [vmem:[%s510_s0 + $0x18] sm:$0xff]  ;;  %v309_v4 = vmov 0.0   ;;  %vm128_vm0 = vcmask 261120  }
   0x8   :  { %135 = vmatprep.subr.mxu0 %v309_v4  ;;  %234 = vmatprep.subr.mxu1 %v309_v4  ;;  %v16_v5 = vld [vmem:[%s510_s0 + $0x20] sm:$0xff]  ;;  %v17_v6 = vld [vmem:[%s510_s0 + $0x28] sm:$0xff]  ;;  %v18_v7 = vld [vmem:[%s510_s0 + $0x30] sm:$0xff]  ;;  %v310_v63 = vmov 1.0   ;;  %s311_s20 = smov [#allocation2]  }
   0x9   :  { %v19_v8 = vld [vmem:[%s510_s0 + $0x38] sm:$0xff]  ;;  %v20_v9 = vld [vmem:[%s510_s0 + $0x40] sm:$0xff]  ;;  %v21_v10 = vld [vmem:[%s510_s0 + $0x48] sm:$0xff]  ;;  %s217_s21 = sshll.u32 %s311_s20, 4  ;;  %s218_s21 = int_to_ptr.vmem [resolvable:$true] %s217_s21 }
   0xa   :  { %30 = vxpose.xlu0.b32.cont [3/16] (narrow) %v14_v2, 32  ;;  %v22_v11 = vld [vmem:[%s510_s0 + $0x50] sm:$0xff]  ;;  %v23_v12 = vld [vmem:[%s510_s0 + $0x58] sm:$0xff]  ;;  %v24_v13 = vld [vmem:[%s510_s0 + $0x60] sm:$0xff]  ;;  %s287_s22 = scalar_lea.vmem %s218_s21, 256  ;;  %p292_p1 = scmp.lt.s32.totalorder %s218_s21, %s218_s21 }
   0xb   :  { %v25_v14 = vld [vmem:[%s510_s0 + $0x68] sm:$0xff]  ;;  %v26_v15 = vld [vmem:[%s510_s0 + $0x70] sm:$0xff]  ;;  %v27_v16 = vld [vmem:[%s510_s0 + $0x78] sm:$0xff]  ;;  %p288_p0 = scmp.ne.s32.totalorder %s218_s21, %s287_s22  ;;  %p293_p2 = scmp.lt.s32.totalorder %s287_s22, %s287_s22 }
   0xc   :  { %v125_v17 = vld [vmem:[%s511_s1 + $0x8] sm:$0xff]  ;;  %v127_v18 = vld [vmem:[%s511_s1 + $0x18] sm:$0xff] }
   0xd   :  { %232 = vmatprep.mubr.msk.f32.mxu0 %vm128_vm0, %v125_v17  ;;  %233 = vmatprep.mubr.msk.f32.mxu1 %vm128_vm0, %v127_v18  ;;  %p294_p3 = por %p293_p2, %p292_p1 }
   0xe   :  { %31 = vxpose.xlu0.b32.cont [4/16] (narrow) %v15_v3, 32 }
   0xf   :  { %p295_p4 = pnand %p294_p3, %p288_p0 }
  0x12   :  { %32 = vxpose.xlu0.b32.cont [5/16] (narrow) %v16_v5, 32 }
  0x16   :  { %33 = vxpose.xlu0.b32.cont [6/16] (narrow) %v17_v6, 32 }
  0x1a   :  { %34 = vxpose.xlu0.b32.cont [7/16] (narrow) %v18_v7, 32 }
  0x1e   :  { %35 = vxpose.xlu0.b32.cont [8/16] (narrow) %v19_v8, 32 }
  0x22   :  { %36 = vxpose.xlu0.b32.cont [9/16] (narrow) %v20_v9, 32 }
  0x26   :  { %37 = vxpose.xlu0.b32.cont [10/16] (narrow) %v21_v10, 32 }
  0x2a   :  { %38 = vxpose.xlu0.b32.cont [11/16] (narrow) %v22_v11, 32 }
  0x2e   :  { %39 = vxpose.xlu0.b32.cont [12/16] (narrow) %v23_v12, 32 }
  0x32   :  { %40 = vxpose.xlu0.b32.cont [13/16] (narrow) %v24_v13, 32  ;;  %v124_v13 = vld [vmem:[%s511_s1] sm:$0xff] }
  0x36   :  { %41 = vxpose.xlu0.b32.cont [14/16] (narrow) %v25_v14, 32  ;;  %v126_v14 = vld [vmem:[%s511_s1 + $0x10] sm:$0xff] }
  0x3a   :  { %42 = vxpose.xlu0.b32.cont [15/16] (narrow) %v26_v15, 32 }
  0x3e   :  { %43 = vxpose.xlu0.b32.end [16/16] (narrow) %v27_v16, 32 }
  0x7e   :  { %v44_v19 = vpop.trf.xlu0 }
  0x82   :  { %v45_v20 = vpop.trf.xlu0 }
  0x83   :  { %279 = vtanh.f32 %v45_v20 }
  0x84   :  { %281 = vtanh.f32 %v44_v19 }
  0x86   :  { %v46_v21 = vpop.trf.xlu0 }
  0x87   :  { %283 = vtanh.f32 %v46_v21 }
  0x8a   :  { %v47_v22 = vpop.trf.xlu0 }
  0x8b   :  { %285 = vtanh.f32 %v47_v22 }
  0x90   :  { %v280_v23 = vpop.eup %279 }
  0x91   :  { %v282_v24 = vpop.eup %281  ;;  %v65_v25 = vmul.f32 4.0, %v280_v23  ;;  %v393_v35 = vmul.f32 1.875, %v280_v23  ;;  %v93_v48 = vmul.f32 1.8666667, %v280_v23 }
  0x92   :  { %v64_v28 = vmul.f32 4.0, %v282_v24  ;;  %v401_v40 = vmul.f32 1.875, %v282_v24  ;;  %v92_v56 = vmul.f32 1.8666667, %v282_v24 }
  0x93   :  { %v389_v31 = vmul.f32 0.5, %v65_v25 }
  0x94   :  { %v284_v26 = vpop.eup %283  ;;  %v395_v36 = vmul.f32 0.5, %v64_v28 }
  0x95   :  { %v66_v27 = vmul.f32 4.0, %v284_v26  ;;  %v387_v30 = vmul.f32 1.875, %v284_v26  ;;  %v85_v39 = vmul.f32 %v393_v35, %v389_v31  ;;  %v94_v46 = vmul.f32 1.8666667, %v284_v26 }
  0x96   :  { %v84_v43 = vmul.f32 %v401_v40, %v395_v36  ;;  %v105_v58 = vmul.f32 0.8, %v389_v31  ;;  %v104_v61 = vmul.f32 0.8, %v395_v36 }
  0x97   :  { %v385_v29 = vmul.f32 0.5, %v66_v27  ;;  %v410_v47 = vadd.f32 -0.75, %v85_v39 }
  0x98   :  { %v286_v32 = vpop.eup %285  ;;  %v414_v52 = vadd.f32 -0.75, %v84_v43 }
  0x99   :  { %v67_v33 = vmul.f32 4.0, %v286_v32  ;;  %v86_v34 = vmul.f32 %v387_v30, %v385_v29  ;;  %v397_v38 = vmul.f32 1.875, %v286_v32  ;;  %v95_v45 = vmul.f32 1.8666667, %v286_v32 }
  0x9a   :  { %v106_v54 = vmul.f32 0.8, %v385_v29  ;;  %v101_v55 = vmul.f32 %v410_v47, %v93_v48  ;;  %v100_v59 = vmul.f32 %v414_v52, %v92_v56  ;;  %v117_v8 = vmul.f32 0.8333333, %v410_v47 }
  0x9b   :  { %v75_v37 = vmul.f32 0.5, %v67_v33  ;;  %v404_v42 = vadd.f32 -0.75, %v86_v34  ;;  %v116_v11 = vmul.f32 0.8333333, %v414_v52 }
  0x9c   :  { %v430_v60 = vsub.f32 %v101_v55, %v105_v58  ;;  %v437_v62 = vsub.f32 %v100_v59, %v104_v61 }
  0x9d   :  { %v87_v41 = vmul.f32 %v397_v38, %v75_v37  ;;  %v107_v50 = vmul.f32 0.8, %v75_v37  ;;  %v102_v51 = vmul.f32 %v404_v42, %v94_v46  ;;  %v118_v5 = vmul.f32 0.8333333, %v404_v42 }
  0x9e   :  { %v113_v6 = vmul.f32 %v430_v60, %v393_v35  ;;  %v112_v9 = vmul.f32 %v437_v62, %v401_v40 }
  0x9f   :  { %v408_v44 = vadd.f32 -0.75, %v87_v41  ;;  %v422_v57 = vsub.f32 %v102_v51, %v106_v54 }
  0xa0   :  { %v121_v10 = vsub.f32 %v113_v6, %v117_v8  ;;  %v120_v12 = vsub.f32 %v112_v9, %v116_v11 }
  0xa1   :  { %v103_v49 = vmul.f32 %v408_v44, %v95_v45  ;;  %v119_v1 = vmul.f32 0.8333333, %v408_v44  ;;  %v114_v2 = vmul.f32 %v422_v57, %v387_v30 }
  0xa3   :  { %v416_v53 = vsub.f32 %v103_v49, %v107_v50  ;;  %v122_v7 = vsub.f32 %v114_v2, %v118_v5 }
  0xa5   :  { %136 = vmatpush1.msra.mxu0 %v416_v53  ;;  %254 = vmatpush1.msra.mxu1 %v416_v53  ;;  %v115_v0 = vmul.f32 %v416_v53, %v397_v38 }
  0xa6   :  { %137 = vmatprep.subr.mxu0 %v309_v4  ;;  %235 = vmatprep.subr.mxu1 %v309_v4 }
  0xa7   :  { %138 = vmatpush1.msra.mxu0 %v422_v57  ;;  %255 = vmatpush1.msra.mxu1 %v422_v57  ;;  %v123_v3 = vsub.f32 %v115_v0, %v119_v1 }
  0xa8   :  { %139 = vmatprep.subr.mxu0 %v309_v4  ;;  %236 = vmatprep.subr.mxu1 %v309_v4 }
  0xa9   :  { %140 = vmatpush1.msra.mxu0 %v430_v60  ;;  %256 = vmatpush1.msra.mxu1 %v430_v60 }
  0xaa   :  { %141 = vmatprep.subr.mxu0 %v309_v4  ;;  %237 = vmatprep.subr.mxu1 %v309_v4 }
  0xab   :  { %142 = vmatpush1.msra.mxu0 %v437_v62  ;;  %257 = vmatpush1.msra.mxu1 %v437_v62 }
  0xac   :  { %143 = vmatprep.subr.mxu0 %v309_v4  ;;  %238 = vmatprep.subr.mxu1 %v309_v4 }
  0xad   :  { %144 = vmatpush1.msra.mxu0 %v408_v44  ;;  %258 = vmatpush1.msra.mxu1 %v408_v44 }
  0xae   :  { %145 = vmatprep.subr.mxu0 %v309_v4  ;;  %239 = vmatprep.subr.mxu1 %v309_v4 }
  0xaf   :  { %146 = vmatpush1.msra.mxu0 %v404_v42  ;;  %259 = vmatpush1.msra.mxu1 %v404_v42 }
  0xb0   :  { %147 = vmatprep.subr.mxu0 %v309_v4  ;;  %240 = vmatprep.subr.mxu1 %v309_v4 }
  0xb1   :  { %148 = vmatpush1.msra.mxu0 %v410_v47  ;;  %260 = vmatpush1.msra.mxu1 %v410_v47 }
  0xb2   :  { %149 = vmatprep.subr.mxu0 %v309_v4  ;;  %241 = vmatprep.subr.mxu1 %v309_v4 }
  0xb3   :  { %150 = vmatpush1.msra.mxu0 %v414_v52  ;;  %261 = vmatpush1.msra.mxu1 %v414_v52 }
  0xb4   :  { %151 = vmatprep.subr.mxu0 %v309_v4  ;;  %242 = vmatprep.subr.mxu1 %v309_v4 }
  0xb5   :  { %152 = vmatpush1.msra.mxu0 %v75_v37  ;;  %262 = vmatpush1.msra.mxu1 %v75_v37 }
  0xb6   :  { %153 = vmatprep.subr.mxu0 %v309_v4  ;;  %243 = vmatprep.subr.mxu1 %v309_v4 }
  0xb7   :  { %154 = vmatpush1.msra.mxu0 %v385_v29  ;;  %263 = vmatpush1.msra.mxu1 %v385_v29 }
  0xb8   :  { %155 = vmatprep.subr.mxu0 %v309_v4  ;;  %244 = vmatprep.subr.mxu1 %v309_v4 }
  0xb9   :  { %156 = vmatpush1.msra.mxu0 %v389_v31  ;;  %264 = vmatpush1.msra.mxu1 %v389_v31 }
  0xba   :  { %157 = vmatprep.subr.mxu0 %v309_v4  ;;  %245 = vmatprep.subr.mxu1 %v309_v4 }
  0xbb   :  { %158 = vmatpush1.msra.mxu0 %v395_v36  ;;  %265 = vmatpush1.msra.mxu1 %v395_v36 }
  0xbc   :  { %159 = vmatprep.subr.mxu0 %v309_v4  ;;  %246 = vmatprep.subr.mxu1 %v309_v4 }
  0xbd   :  { %160 = vmatpush1.msra.mxu0 %v310_v63  ;;  %266 = vmatpush1.msra.mxu1 %v310_v63 }
  0xbe   :  { %161 = vmatprep.subr.mxu0 %v309_v4  ;;  %247 = vmatprep.subr.mxu1 %v309_v4 }
  0xbf   :  { %162 = vmatpush1.msra.mxu0 %v310_v63  ;;  %267 = vmatpush1.msra.mxu1 %v310_v63 }
  0xc0   :  { %163 = vmatprep.subr.mxu0 %v309_v4  ;;  %248 = vmatprep.subr.mxu1 %v309_v4 }
  0xc1   :  { %164 = vmatpush1.msra.mxu0 %v310_v63  ;;  %268 = vmatpush1.msra.mxu1 %v310_v63 }
  0xc2   :  { %165 = vmatprep.subr.mxu0 %v309_v4  ;;  %249 = vmatprep.subr.mxu1 %v309_v4 }
  0xc3   :  { %166 = vmatpush1.msra.mxu0 %v310_v63  ;;  %269 = vmatpush1.msra.mxu1 %v310_v63 }
  0xc4   :  { %191 = vmatprep.subr.mxu0 %v309_v4  ;;  %250 = vmatprep.subr.mxu1 %v309_v4 }
  0xc5   :  { %192 = vmatpush2.msra.mxu0 %v123_v3  ;;  %270 = vmatpush2.msra.mxu1 %v123_v3 }
  0xc6   :  { %193 = vmatprep.subr.mxu0 %v309_v4  ;;  %251 = vmatprep.subr.mxu1 %v309_v4 }
  0xc7   :  { %194 = vmatpush2.msra.mxu0 %v122_v7  ;;  %271 = vmatpush2.msra.mxu1 %v122_v7 }
  0xc8   :  { %195 = vmatprep.subr.mxu0 %v309_v4  ;;  %252 = vmatprep.subr.mxu1 %v309_v4 }
  0xc9   :  { %196 = vmatpush2.msra.mxu0 %v121_v10  ;;  %272 = vmatpush2.msra.mxu1 %v121_v10 }
  0xca   :  { %197 = vmatprep.subr.mxu0 %v309_v4  ;;  %253 = vmatprep.subr.mxu1 %v309_v4 }
  0xcb   :  { %198 = vmatpush2.msra.mxu0 %v120_v12  ;;  %273 = vmatpush2.msra.mxu1 %v120_v12 }
  0xcc   :  { %200 = vmatmul.mubr.f32.vlgmr.msra.gmra.mxu0 %v124_v13  ;;  %205 = vmatmul.mubr.f32.vlgmr.msra.gmra.mxu1 %v126_v14 }
 0x18c   :  { %v201_v15 = vpop.f32.mrf.mxu0  ;;  %v206_v16 = vpop.f32.mrf.mxu1 }
 0x18d   :  { %210 = vst [vmem:[#allocation2] sm:$0xff] %v201_v15  ;;  %211 = vst [vmem:[#allocation2 + $0x8] sm:$0xff] %v206_v16 }
 0x18e   :  { %v203_v17 = vpop.f32.mrf.mxu0  ;;  %v208_v18 = vpop.f32.mrf.mxu1 }
 0x18f   :  { %298 = shalt.err (!%p295_p4)
}
 0x190   :  { %s312_s1 = smov 128   ;;  %s313_s23 = smov 8  }
 0x191   :  { %223 = dma.vmem_to_hbm [thread:$0]  %s218_s21, 256, %s512_s2, [#allocation3], %s312_s1, %s312_s1, %s313_s23  }
 0x192   :  { %307 = dma.done.wait [#allocation3], 256  }
 0x193   :  { %308 = vsyncadd [#allocation3], 4294967040 }
 0x194   :  { %227 = vsyncpa [#allocation3], 1 }

</bundles_post_ra>
